<compile_context>
chip_gen: v7x
topology: tpu7x:2x2x1
jax: 0.10.0
libtpu: 0.0.40
codegen_flags: <defaults>
</compile_context>

<pallas_src>
import functools

import jax
import jax.numpy as jnp
from jax.experimental import pallas as pl
from jax.experimental.pallas import tpu as pltpu


# ----------------------------- helpers ---------------------------------------


def _round_up(x, m):
    return ((x + m - 1) // m) * m


def _pick_rows(n, d, *, target_bytes=4 << 20, cap=2048):
    """Row-tile for elementwise kernels: ~target_bytes per (rows, d) f32 block."""
    rows = max(8, min(cap, target_bytes // max(d * 4, 1)))
    rows = (rows // 8) * 8
    return min(rows, _round_up(n, 8))


def _pick_tm(m, d, tn, *, budget_bytes=12 << 20):
    """Row-tile for the fused kernel, sized so double-buffered blocks stay under
    the default scoped-VMEM limit on every generation (v5e 16MiB .. v7x 64MiB phys)."""
    per_row = (2 * d + 4 * tn + d) * 4            # x_ln(2x) + x_res/out(2x each) + scratch
    fixed = 2 * d * tn * 4 + 2 * tn * 4           # W(2x) + bias(2x)
    tm = (budget_bytes - fixed) // max(per_row, 1)
    tm = max(8, min(int(tm), 1024, _round_up(m, 8)))
    return (tm // 8) * 8


# ----------------------------- kernels ----------------------------------------


def _layernorm_kernel(x_ref, g_ref, b_ref, o_ref, *, eps):
    x = x_ref[...].astype(jnp.float32)                        # [rows, D]
    d = x.shape[-1]
    mean = jnp.mean(x, axis=-1, keepdims=True)
    xc = x - mean
    var = jnp.sum(xc * xc, axis=-1, keepdims=True) / (d - 1)   # torch std: ddof=1
    inv = pl.reciprocal(jnp.sqrt(var) + eps, approx=False)     # one recip + mul per row
    y = xc * (g_ref[...].astype(jnp.float32) * inv) + b_ref[...].astype(jnp.float32)
    o_ref[...] = y.astype(o_ref.dtype)


def _residual_add_kernel(x_ref, y_ref, o_ref):
    o_ref[...] = x_ref[...] + y_ref[...]


def _fused_ln_linear_res_kernel(x_ln_ref, x_res_ref, w_ref, bias_ref, g_ref, b_ref,
                                o_ref, normed_ref, *, eps):
    j = pl.program_id(1)

    @pl.when(j == 0)
    def _():
        # LayerNorm of the (tm, K) row tile; cached in VMEM scratch and reused
        # for every output-column tile j of this row tile.
        x = x_ln_ref[...].astype(jnp.float32)
        d = x.shape[-1]
        mean = jnp.mean(x, axis=-1, keepdims=True)
        xc = x - mean
        var = jnp.sum(xc * xc, axis=-1, keepdims=True) / (d - 1)   # ddof=1
        inv = pl.reciprocal(jnp.sqrt(var) + eps, approx=False)
        normed_ref[...] = (xc * (g_ref[...].astype(jnp.float32) * inv)
                           + b_ref[...].astype(jnp.float32))

    acc = jnp.dot(normed_ref[...].astype(w_ref.dtype), w_ref[...],
                  preferred_element_type=jnp.float32)
    acc = acc + bias_ref[...].astype(jnp.float32) + x_res_ref[...].astype(jnp.float32)
    # TODO(synk): training-mode dropout mask would be applied to the sublayer
    # output here; module runs in eval mode (identity).
    o_ref[...] = acc.astype(o_ref.dtype)


# ----------------------------- wrappers ----------------------------------------


def layer_norm(x2d, a_2, b_2, *, eps=1e-6):
    """x2d: [N, D]; a_2, b_2: [D]. Rows are padded (no divisibility requirement)."""
    n, d = x2d.shape
    rows = _pick_rows(n, d)
    n_pad = _round_up(n, rows)
    xp = jnp.pad(x2d, ((0, n_pad - n), (0, 0))) if n_pad != n else x2d
    g = a_2.reshape(1, d)
    b = b_2.reshape(1, d)
    out = pl.pallas_call(
        functools.partial(_layernorm_kernel, eps=eps),
        out_shape=jax.ShapeDtypeStruct((n_pad, d), x2d.dtype),
        grid=(n_pad // rows,),
        in_specs=[
            pl.BlockSpec((rows, d), lambda i: (i, 0)),
            pl.BlockSpec((1, d), lambda i: (0, 0)),
            pl.BlockSpec((1, d), lambda i: (0, 0)),
        ],
        out_specs=pl.BlockSpec((rows, d), lambda i: (i, 0)),
        compiler_params=pltpu.CompilerParams(
            dimension_semantics=("parallel",),
            vmem_limit_bytes=48 << 20,
        ),
    )(xp, g, b)
    return out[:n] if n_pad != n else out


def residual_add(x, y):
    """x + y for same-shape arrays, viewed in a lane-dense [rows, 512] layout."""
    assert x.shape == y.shape and x.dtype == y.dtype
    shape, dtype = x.shape, x.dtype
    t = x.size
    width = 512                                    # large multiple of 128 lanes
    rows = pl.cdiv(t, width)
    tile = max(8, min(1024, _round_up(rows, 8)))
    tile = (tile // 8) * 8
    rows_pad = _round_up(rows, tile)
    pad = rows_pad * width - t
    xf = jnp.pad(x.reshape(-1), (0, pad)).reshape(rows_pad, width)
    yf = jnp.pad(y.reshape(-1), (0, pad)).reshape(rows_pad, width)
    out = pl.pallas_call(
        _residual_add_kernel,
        out_shape=jax.ShapeDtypeStruct((rows_pad, width), dtype),
        grid=(rows_pad // tile,),
        in_specs=[
            pl.BlockSpec((tile, width), lambda i: (i, 0)),
            pl.BlockSpec((tile, width), lambda i: (i, 0)),
        ],
        out_specs=pl.BlockSpec((tile, width), lambda i: (i, 0)),
        compiler_params=pltpu.CompilerParams(
            dimension_semantics=("parallel",),
            vmem_limit_bytes=48 << 20,
        ),
    )(xf, yf)
    return out.reshape(-1)[:t].reshape(shape)


def sublayer_connection_fused(x, a_2, b_2, w, bias, *, eps=1e-6):
    """Fully fused  x + (LayerNorm(x) @ w + bias)  for the linear-sublayer case.
    x: [B, S, D]; w: [D, D]; bias: [D]. Dropout in eval mode (identity)."""
    b, s, d = x.shape
    assert w.shape == (d, d) and bias.shape == (d,) and d >= 2
    m = b * s
    x2d = x.reshape(m, d)

    n_pad = _round_up(d, 128)                      # lane-dense output columns
    tn = 256 if n_pad % 256 == 0 else 128          # MXU-friendly tile on v6e/v7x
    tm = _pick_tm(m, d, tn)
    m_pad = _round_up(m, tm)

    x_ln = jnp.pad(x2d, ((0, m_pad - m), (0, 0)))
    x_res = jnp.pad(x2d, ((0, m_pad - m), (0, n_pad - d)))
    w_p = jnp.pad(w, ((0, 0), (0, n_pad - d)))
    bias_p = jnp.pad(bias.reshape(1, d), ((0, 0), (0, n_pad - d)))
    g = a_2.reshape(1, d)
    bb = b_2.reshape(1, d)

    out = pl.pallas_call(
        functools.partial(_fused_ln_linear_res_kernel, eps=eps),
        out_shape=jax.ShapeDtypeStruct((m_pad, n_pad), x.dtype),
        grid=(m_pad // tm, n_pad // tn),
        in_specs=[
            pl.BlockSpec((tm, d), lambda i, j: (i, 0)),    # x row tile for LayerNorm (full K)
            pl.BlockSpec((tm, tn), lambda i, j: (i, j)),   # x tile for residual add
            pl.BlockSpec((d, tn), lambda i, j: (0, j)),    # W column tile
            pl.BlockSpec((1, tn), lambda i, j: (0, j)),    # bias tile
            pl.BlockSpec((1, d), lambda i, j: (0, 0)),     # gamma
            pl.BlockSpec((1, d), lambda i, j: (0, 0)),     # beta
        ],
        out_specs=pl.BlockSpec((tm, tn), lambda i, j: (i, j)),
        scratch_shapes=[pltpu.VMEM((tm, d), jnp.float32)],  # cached normed row tile
        compiler_params=pltpu.CompilerParams(
            # j reuses the normed scratch computed at j == 0 -> must stay sequential.
            dimension_semantics=("parallel", "arbitrary"),
            vmem_limit_bytes=48 << 20,
        ),
    )(x_ln, x_res, w_p, bias_p, g, bb)
    return out[:m, :d].reshape(b, s, d)


def sublayer_connection(x, a_2, b_2, sublayer, *, eps=1e-6):
    """Generic path: arbitrary (opaque) sublayer callable runs as plain JAX."""
    b, s, d = x.shape
    x2d = x.reshape(b * s, d)
    normed = layer_norm(x2d, a_2, b_2, eps=eps).reshape(b, s, d)
    sub_out = sublayer(normed)
    # TODO(synk): training-mode dropout mask on sub_out (identity in eval mode).
    return residual_add(x, sub_out)


# ----------------------------- demo / check ------------------------------------


if __name__ == "__main__":
    B, S, D = 2, 8, 32
    key = jax.random.PRNGKey(0)
    kx, kw, kb, kg, kbeta = jax.random.split(key, 5)

    x = jax.random.normal(kx, (B, S, D), dtype=jnp.float32)

    # LayerNorm params (init is ones/zeros; perturb slightly so affine terms are tested).
    a_2 = 1.0 + 0.1 * jax.random.normal(kg, (D,), dtype=jnp.float32)
    b_2 = 0.05 * jax.random.normal(kbeta, (D,), dtype=jnp.float32)

    # Deterministic example sublayer: a linear projection.
    W = jax.random.normal(kw, (D, D), dtype=jnp.float32) * 0.02
    bias = jax.random.normal(kb, (D,), dtype=jnp.float32) * 0.01
    sublayer = lambda h: jnp.einsum("bsd,de->bse", h, W, precision="highest") + bias

    out_fused = jax.block_until_ready(sublayer_connection_fused(x, a_2, b_2, W, bias))
    out_generic = jax.block_until_ready(sublayer_connection(x, a_2, b_2, sublayer))

    # Pure-JAX reference (torch semantics: std with ddof=1, (std + eps) denominator).
    mean = jnp.mean(x, axis=-1, keepdims=True)
    std = jnp.std(x, axis=-1, keepdims=True, ddof=1)
    normed_ref = a_2 * (x - mean) / (std + 1e-6) + b_2
    ref = x + (jnp.einsum("bsd,de->bse", normed_ref, W, precision="highest") + bias)

    assert jnp.allclose(out_generic, ref, atol=1e-5, rtol=1e-5), "generic path mismatch"
    # The fused kernel's in-kernel MXU matmul may use a different f32 precision mode
    # than the XLA reference einsum, so compare with a correspondingly looser bound.
    assert jnp.allclose(out_fused, ref, atol=2e-2, rtol=2e-2), "fused path mismatch"

    print("KERNEL_OK")
</pallas_src>

<mosaic_0001>
module attributes {stable_mosaic.version = 11 : i64} {
  func.func @_fused_ln_linear_res_kernel(%arg0: i32, %arg1: i32, %arg2: memref<16x32xf32, #tpu.memory_space<vmem>>, %arg3: memref<16x128xf32, #tpu.memory_space<vmem>>, %arg4: memref<32x128xf32, #tpu.memory_space<vmem>>, %arg5: memref<1x128xf32, #tpu.memory_space<vmem>>, %arg6: memref<1x32xf32, #tpu.memory_space<vmem>>, %arg7: memref<1x32xf32, #tpu.memory_space<vmem>>, %arg8: memref<16x128xf32, #tpu.memory_space<vmem>>, %arg9: memref<16x32xf32, #tpu.memory_space<vmem>>) attributes {dimension_semantics = [#tpu.dimension_semantics<parallel>, #tpu.dimension_semantics<arbitrary>], iteration_bounds = array<i64: 1, 1>, scalar_prefetch = 0 : i64, scratch_operands = 1 : i64, tpu.core_type = #tpu.core_type<tc>, window_params = [{transform_indices = @transform_0, window_bounds = array<i64: 16, 32>}, {transform_indices = @transform_1, window_bounds = array<i64: 16, 128>}, {transform_indices = @transform_2, window_bounds = array<i64: 32, 128>}, {transform_indices = @transform_3, window_bounds = array<i64: 1, 128>}, {pipeline_mode = #tpu.pipeline_mode<synchronous>, transform_indices = @transform_4, window_bounds = array<i64: 1, 32>}, {pipeline_mode = #tpu.pipeline_mode<synchronous>, transform_indices = @transform_5, window_bounds = array<i64: 1, 32>}, {transform_indices = @transform_6, window_bounds = array<i64: 16, 128>}]} {
    %c0_i32 = arith.constant 0 : i32
    %0 = arith.cmpi eq, %arg1, %c0_i32 : i32
    %1 = arith.extui %0 : i1 to i32
    %c0_i32_0 = arith.constant 0 : i32
    %2 = arith.cmpi ne, %1, %c0_i32_0 : i32
    scf.if %2 {
      %c0_10 = arith.constant 0 : index
      %c0_11 = arith.constant 0 : index
      %12 = vector.load %arg2[%c0_10, %c0_11] : memref<16x32xf32, #tpu.memory_space<vmem>>, vector<16x32xf32>
      %cst_12 = arith.constant dense<0.000000e+00> : vector<16xf32>
      %13 = vector.multi_reduction <add>, %12, %cst_12 [1] : vector<16x32xf32> to vector<16xf32>
      %14 = vector.shape_cast %13 : vector<16xf32> to vector<16x1xf32>
      %cst_13 = arith.constant 3.200000e+01 : f32
      %15 = vector.broadcast %cst_13 : f32 to vector<16x1xf32>
      %16 = arith.divf %14, %15 : vector<16x1xf32>
      %17 = vector.broadcast %16 : vector<16x1xf32> to vector<16x32xf32>
      %18 = arith.subf %12, %17 : vector<16x32xf32>
      %19 = arith.mulf %18, %18 : vector<16x32xf32>
      %cst_14 = arith.constant dense<0.000000e+00> : vector<16xf32>
      %20 = vector.multi_reduction <add>, %19, %cst_14 [1] : vector<16x32xf32> to vector<16xf32>
      %21 = vector.shape_cast %20 : vector<16xf32> to vector<16x1xf32>
      %cst_15 = arith.constant 3.100000e+01 : f32
      %22 = vector.broadcast %cst_15 : f32 to vector<16x1xf32>
      %23 = arith.divf %21, %22 : vector<16x1xf32>
      %24 = math.sqrt %23 : vector<16x1xf32>
      %cst_16 = arith.constant 9.99999997E-7 : f32
      %25 = vector.broadcast %cst_16 : f32 to vector<16x1xf32>
      %26 = arith.addf %24, %25 : vector<16x1xf32>
      %27 = tpu.reciprocal %26 : vector<16x1xf32> -> vector<16x1xf32>
      %c0_17 = arith.constant 0 : index
      %c0_18 = arith.constant 0 : index
      %28 = vector.load %arg6[%c0_17, %c0_18] : memref<1x32xf32, #tpu.memory_space<vmem>>, vector<1x32xf32>
      %29 = vector.broadcast %28 : vector<1x32xf32> to vector<16x32xf32>
      %30 = vector.broadcast %27 : vector<16x1xf32> to vector<16x32xf32>
      %31 = arith.mulf %29, %30 : vector<16x32xf32>
      %32 = arith.mulf %18, %31 : vector<16x32xf32>
      %c0_19 = arith.constant 0 : index
      %c0_20 = arith.constant 0 : index
      %33 = vector.load %arg7[%c0_19, %c0_20] : memref<1x32xf32, #tpu.memory_space<vmem>>, vector<1x32xf32>
      %34 = vector.broadcast %33 : vector<1x32xf32> to vector<16x32xf32>
      %35 = arith.addf %32, %34 : vector<16x32xf32>
      %c0_21 = arith.constant 0 : index
      %c0_22 = arith.constant 0 : index
      %36 = vector.load %arg9[%c0_21, %c0_22] : memref<16x32xf32, #tpu.memory_space<vmem>>, vector<16x32xf32>
      tpu.vector_store %arg9[%c0_21, %c0_22], %35 {strides = array<i32>} : memref<16x32xf32, #tpu.memory_space<vmem>>, vector<16x32xf32>,
    } else {
    }
    %c0 = arith.constant 0 : index
    %c0_1 = arith.constant 0 : index
    %3 = vector.load %arg9[%c0, %c0_1] : memref<16x32xf32, #tpu.memory_space<vmem>>, vector<16x32xf32>
    %c0_2 = arith.constant 0 : index
    %c0_3 = arith.constant 0 : index
    %4 = vector.load %arg4[%c0_2, %c0_3] : memref<32x128xf32, #tpu.memory_space<vmem>>, vector<32x128xf32>
    %cst = arith.constant dense<0.000000e+00> : vector<16x128xf32>
    %5 = tpu.matmul %3, %4, %cst {dimension_numbers = #tpu.dot_dimension_numbers<[1], [0], [0], [1], [0, 0, 1, 1], [], []>} : vector<16x32xf32>, vector<32x128xf32>, vector<16x128xf32> -> vector<16x128xf32>
    %c0_4 = arith.constant 0 : index
    %c0_5 = arith.constant 0 : index
    %6 = vector.load %arg5[%c0_4, %c0_5] : memref<1x128xf32, #tpu.memory_space<vmem>>, vector<1x128xf32>
    %7 = vector.broadcast %6 : vector<1x128xf32> to vector<16x128xf32>
    %8 = arith.addf %5, %7 : vector<16x128xf32>
    %c0_6 = arith.constant 0 : index
    %c0_7 = arith.constant 0 : index
    %9 = vector.load %arg3[%c0_6, %c0_7] : memref<16x128xf32, #tpu.memory_space<vmem>>, vector<16x128xf32>
    %10 = arith.addf %8, %9 : vector<16x128xf32>
    %c0_8 = arith.constant 0 : index
    %c0_9 = arith.constant 0 : index
    %11 = vector.load %arg8[%c0_8, %c0_9] : memref<16x128xf32, #tpu.memory_space<vmem>>, vector<16x128xf32>
    tpu.vector_store %arg8[%c0_8, %c0_9], %10 {strides = array<i32>} : memref<16x128xf32, #tpu.memory_space<vmem>>, vector<16x128xf32>,
    return
  }
  func.func @transform_0(%arg0: i32, %arg1: i32) -> (i32, i32) {
    %c0_i32 = arith.constant 0 : i32
    %c0_i32_0 = arith.constant 0 : i32
    return %arg0, %c0_i32 : i32, i32
  }
  func.func @transform_1(%arg0: i32, %arg1: i32) -> (i32, i32) {
    %c0_i32 = arith.constant 0 : i32
    return %arg0, %arg1 : i32, i32
  }
  func.func @transform_2(%arg0: i32, %arg1: i32) -> (i32, i32) {
    %c0_i32 = arith.constant 0 : i32
    %c0_i32_0 = arith.constant 0 : i32
    return %c0_i32, %arg1 : i32, i32
  }
  func.func @transform_3(%arg0: i32, %arg1: i32) -> (i32, i32) {
    %c0_i32 = arith.constant 0 : i32
    %c0_i32_0 = arith.constant 0 : i32
    return %c0_i32, %arg1 : i32, i32
  }
  func.func @transform_4(%arg0: i32, %arg1: i32) -> (i32, i32) {
    %c0_i32 = arith.constant 0 : i32
    %c0_i32_0 = arith.constant 0 : i32
    %c0_i32_1 = arith.constant 0 : i32
    return %c0_i32, %c0_i32_0 : i32, i32
  }
  func.func @transform_5(%arg0: i32, %arg1: i32) -> (i32, i32) {
    %c0_i32 = arith.constant 0 : i32
    %c0_i32_0 = arith.constant 0 : i32
    %c0_i32_1 = arith.constant 0 : i32
    return %c0_i32, %c0_i32_0 : i32, i32
  }
  func.func @transform_6(%arg0: i32, %arg1: i32) -> (i32, i32) {
    %c0_i32 = arith.constant 0 : i32
    return %arg0, %arg1 : i32, i32
  }
}

</mosaic_0001>

<bundles_post_ra>
// kernel: tpu_custom_call.1
= control target key start
LH: loop header
LB: loop body
LE: loop exit
PB: predicated region body
PF: predicated region fallthrough
CT: control target
= control target key end

     0   :  { %11 = vsyncpa [#allocation4], 0  ;;  %s516_s0 = inlined_call_operand.hbm [shape: f32[16,32], index: 0, kind: input, shape index: {}]   ;;  %s517_s1 = inlined_call_operand.hbm [shape: f32[16,128], index: 1, kind: input, shape index: {}]   ;;  %s518_s2 = inlined_call_operand.hbm [shape: f32[32,128], index: 2, kind: input, shape index: {}]   ;;  %s519_s3 = inlined_call_operand.vmem [shape: f32[1,128], index: 3, kind: input, shape index: {}]   ;;  %s520_s4 = inlined_call_operand.vmem [shape: f32[1,32], index: 4, kind: input, shape index: {}]   ;;  %s521_s5 = inlined_call_operand.vmem [shape: f32[1,32], index: 5, kind: input, shape index: {}]   ;;  %s522_s6 = inlined_call_operand.hbm [shape: f32[16,128], index: 6, kind: output, shape index: {}]  }
   0x1   :  { %12 = vsyncpa [#allocation7], 0 }
   0x2   :  { %13 = vsyncpa [#allocation5], 0  ;;  %s391_s21 = smov [#allocation6]   ;;  %s392_s23 = smov [#allocation3]  }
   0x3   :  { %s31_s22 = sshll.u32 %s391_s21, 4  ;;  %s19_s24 = sshll.u32 %s392_s23, 4  ;;  %s32_s22 = int_to_ptr.vmem [resolvable:$true] %s31_s22  ;;  %s432_s24 = int_to_ptr.vmem [resolvable:$true] %s19_s24 }
   0x4   :  { %s297_s27 = scalar_lea.hbm %s517_s1, 256 }
   0x5   :  { %p298_p0 = scmp.ne.s32.totalorder %s517_s1, %s297_s27  ;;  %p301_p1 = scmp.lt.u32.totalorder %s297_s27, %s517_s1 }
   0x7   :  { %p303_p2 = pnand %p301_p1, %p298_p0 }
   0x9   :  { %306 = shalt.err (!%p303_p2)
}
   0xa   :  { %s307_s8 = scalar_lea.vmem %s32_s22, 256  ;;  %p312_p4 = scmp.lt.s32.totalorder %s32_s22, %s32_s22 }
   0xb   :  { %p308_p3 = scmp.ne.s32.totalorder %s32_s22, %s307_s8  ;;  %p313_p5 = scmp.lt.s32.totalorder %s307_s8, %s307_s8 }
   0xd   :  { %p314_p6 = por %p313_p5, %p312_p4 }
   0xf   :  { %p315_p7 = pnand %p314_p6, %p308_p3 }
  0x11   :  { %318 = shalt.err (!%p315_p7)
}
  0x12   :  { %s393_s9 = smov 128   ;;  %s394_s10 = smov 8  }
  0x13   :  { %37 = dma.hbm_to_vmem [thread:$0]  %s517_s1, 256, %s32_s22, [#allocation7], %s393_s9, %s393_s9, %s394_s10  }
  0x14   :  { %s319_s15 = scalar_lea.hbm %s516_s0, 256 }
  0x15   :  { %p320_p8 = scmp.ne.s32.totalorder %s516_s0, %s319_s15  ;;  %p323_p9 = scmp.lt.u32.totalorder %s319_s15, %s516_s0 }
  0x17   :  { %p325_p10 = pnand %p323_p9, %p320_p8 }
  0x19   :  { %328 = shalt.err (!%p325_p10)
}
  0x1a   :  { %s329_s20 = scalar_lea.vmem %s432_s24, 256  ;;  %p334_p12 = scmp.lt.s32.totalorder %s432_s24, %s432_s24 }
  0x1b   :  { %p330_p11 = scmp.ne.s32.totalorder %s432_s24, %s329_s20  ;;  %p335_p13 = scmp.lt.s32.totalorder %s329_s20, %s329_s20 }
  0x1d   :  { %p336_p0 = por %p335_p13, %p334_p12 }
  0x1f   :  { %p337_p1 = pnand %p336_p0, %p330_p11 }
  0x21   :  { %340 = shalt.err (!%p337_p1)
}
  0x22   :  { %25 = dma.hbm_to_vmem [thread:$0]  %s516_s0, 256, %s432_s24, [#allocation4], %s393_s9, %s393_s9, %s394_s10  }
  0x23   :  { %s395_s22 = smov [#allocation8]   ;;  %s341_s27 = scalar_lea.hbm %s518_s2, 512 }
  0x24   :  { %s43_s23 = sshll.u32 %s395_s22, 4  ;;  %p342_p2 = scmp.ne.s32.totalorder %s518_s2, %s341_s27  ;;  %s44_s23 = int_to_ptr.vmem [resolvable:$true] %s43_s23 }
  0x25   :  { %p345_p3 = scmp.lt.u32.totalorder %s341_s27, %s518_s2 }
  0x27   :  { %p347_p4 = pnand %p345_p3, %p342_p2 }
  0x29   :  { %350 = shalt.err (!%p347_p4)
}
  0x2a   :  { %s351_s8 = scalar_lea.vmem %s44_s23, 512  ;;  %p356_p6 = scmp.lt.s32.totalorder %s44_s23, %s44_s23 }
  0x2b   :  { %p352_p5 = scmp.ne.s32.totalorder %s44_s23, %s351_s8  ;;  %p357_p7 = scmp.lt.s32.totalorder %s351_s8, %s351_s8 }
  0x2d   :  { %p358_p8 = por %p357_p7, %p356_p6 }
  0x2f   :  { %p359_p9 = pnand %p358_p8, %p352_p5 }
  0x31   :  { %362 = shalt.err (!%p359_p9)
}
  0x32   :  { %49 = dma.hbm_to_vmem [thread:$0]  %s518_s2, 512, %s44_s23, [#allocation7], %s393_s9, %s393_s9, %s394_s10  }
  0x33   :  { %385 = dma.done.wait [#allocation4], 256  }
  0x34   :  { %386 = vsyncadd [#allocation4], 4294967040 }
  0x35   :  { %387 = dma.done.wait [#allocation7], 768  }
  0x36   :  { %388 = vsyncadd [#allocation7], 4294966528  ;;  %vm71_vm0 = vcmask 261120   ;;  %v69_v0 = vld [vmem:[#allocation3] sm:$0xff]  ;;  %v70_v1 = vld [vmem:[#allocation3 + $0x8] sm:$0xff] }
  0x37   :  { %v72_v2 = vsel %vm71_vm0, %v69_v0, 0.0  ;;  %v75_v3 = vsel %vm71_vm0, %v70_v1, 0.0  ;;  %v136_v14 = vld [vmem:[#allocation8] sm:$0xff]  ;;  %v137_v15 = vld [vmem:[#allocation8 + $0x8] sm:$0xff]  ;;  %v138_v17 = vld [vmem:[#allocation8 + $0x10] sm:$0xff] }
  0x38   :  { %73 = vadd.xlane.f32.xlu0 %v72_v2  ;;  %v275_v16 = vpack.c.bf16 %v137_v15, %v136_v14  ;;  %v139_v18 = vld [vmem:[#allocation8 + $0x18] sm:$0xff]  ;;  %v253_v36 = vld [vmem:[%s520_s4] ss:$0 sm:$0xff] }
  0x39   :  { %v279_v19 = vpack.c.bf16 %v139_v18, %v138_v17  ;;  %v254_v39 = vld [vmem:[%s521_s5] ss:$0 sm:$0xff]  ;;  %v230_v50 = vld [vmem:[#allocation6 + $0x8] sm:$0xff]  ;;  %s396_s5 = smov [#allocation9]  }
  0x3a   :  { %276 = vmatprep.subr.bf16.mxu0 %v275_v16  ;;  %v255_v48 = vld [vmem:[%s519_s3] ss:$0 sm:$0xff]  ;;  %s240_s15 = sshll.u32 %s396_s5, 4  ;;  %s241_s15 = int_to_ptr.vmem [resolvable:$true] %s240_s15 }
  0x3b   :  { %278 = vmatpush3.bf16.msra.mxu0 %v275_v16  ;;  %v229_v53 = vld [vmem:[#allocation6] sm:$0xff]  ;;  %s363_s16 = scalar_lea.vmem %s241_s15, 256  ;;  %p368_p11 = scmp.lt.s32.totalorder %s241_s15, %s241_s15 }
  0x3c   :  { %76 = vadd.xlane.f32.xlu0 %v75_v3  ;;  %280 = vmatprep.subr.bf16.mxu0 %v279_v19  ;;  %p364_p10 = scmp.ne.s32.totalorder %s241_s15, %s363_s16  ;;  %p369_p12 = scmp.lt.s32.totalorder %s363_s16, %s363_s16 }
  0x3e   :  { %p370_p13 = por %p369_p12, %p368_p11 }
  0x3f   :  { %282 = vmatpush3.bf16.msra.mxu0 %v279_v19 }
  0x40   :  { %p371_p0 = pnand %p370_p13, %p364_p10 }
  0xc5   :  { %v74_v4 = vpop.xlane.xlu0 %73 }
  0xc6   :  { %v79_v5 = vmul.f32 0.03125, %v74_v4 }
  0xc8   :  { %v81_v6 = vsub.f32 %v69_v0, %v79_v5 }
  0xc9   :  { %v77_v7 = vpop.xlane.xlu0 %76 }
  0xca   :  { %v80_v8 = vmul.f32 0.03125, %v77_v7  ;;  %v83_v9 = vmul.f32 %v81_v6, %v81_v6 }
  0xcc   :  { %v82_v10 = vsub.f32 %v70_v1, %v80_v8  ;;  %v85_v11 = vsel %vm71_vm0, %v83_v9, 0.0 }
  0xcd   :  { %86 = vadd.xlane.f32.xlu1 %v85_v11 }
  0xce   :  { %v84_v12 = vmul.f32 %v82_v10, %v82_v10 }
  0xd0   :  { %v88_v13 = vsel %vm71_vm0, %v84_v12, 0.0 }
  0xd1   :  { %89 = vadd.xlane.f32.xlu1 %v88_v13 }
 0x15a   :  { %v87_v20 = vpop.xlane.xlu1 %86 }
 0x15b   :  { %v92_v21 = vmul.f32 0.032258064, %v87_v20 }
 0x15d   :  { %289 = vrsqrt.f32 %v92_v21  ;;  %vm96_vm1 = vcmp.eq.f32.partialorder %v92_v21, inf  ;;  %v99_v26 = vand.u32 2147483648, %v92_v21  ;;  %vm98_vm2 = vcmp.eq.f32.partialorder %v92_v21, 0.0 }
 0x15e   :  { %v90_v22 = vpop.xlane.xlu1 %89 }
 0x15f   :  { %v93_v23 = vmul.f32 0.032258064, %v90_v22 }
 0x161   :  { %291 = vrsqrt.f32 %v93_v23  ;;  %vm103_vm3 = vcmp.eq.f32.partialorder %v93_v23, inf  ;;  %v106_v32 = vand.u32 2147483648, %v93_v23  ;;  %vm105_vm4 = vcmp.eq.f32.partialorder %v93_v23, 0.0 }
 0x167   :  { %v290_v24 = vpop.eup %289 }
 0x168   :  { %v95_v25 = vmul.f32 %v290_v24, %v92_v21 }
 0x16a   :  { %v97_v27 = vsel %vm96_vm1, %v92_v21, %v95_v25 }
 0x16b   :  { %v292_v28 = vpop.eup %291  ;;  %v100_v29 = vsel %vm98_vm2, %v99_v26, %v97_v27 }
 0x16c   :  { %v108_v30 = vadd.f32 1e-06, %v100_v29  ;;  %v102_v31 = vmul.f32 %v292_v28, %v93_v23 }
 0x16e   :  { %293 = vrcp.f32 %v108_v30  ;;  %v104_v33 = vsel %vm103_vm3, %v93_v23, %v102_v31 }
 0x16f   :  { %v107_v34 = vsel %vm105_vm4, %v106_v32, %v104_v33 }
 0x170   :  { %v109_v35 = vadd.f32 1e-06, %v107_v34 }
 0x172   :  { %295 = vrcp.f32 %v109_v35 }
 0x178   :  { %v294_v37 = vpop.eup %293 }
 0x179   :  { %v119_v38 = vmul.f32 %v294_v37, %v253_v36 }
 0x17b   :  { %v121_v40 = vmul.f32 %v119_v38, %v81_v6 }
 0x17c   :  { %v296_v41 = vpop.eup %295 }
 0x17d   :  { %v130_v42 = vadd.f32 %v254_v39, %v121_v40  ;;  %v120_v43 = vmul.f32 %v296_v41, %v253_v36 }
 0x17f   :  { %132 = vst.msk [vmem:[#allocation2] sm:$0xff] %vm71_vm0, %v130_v42  ;;  %v122_v44 = vmul.f32 %v120_v43, %v82_v10 }
 0x181   :  { %v131_v45 = vadd.f32 %v254_v39, %v122_v44 }
 0x183   :  { %133 = vst.msk [vmem:[#allocation2 + $0x8] sm:$0xff] %vm71_vm0, %v131_v45 }
 0x186   :  { %v134_v46 = vld [vmem:[#allocation2] sm:$0xff] }
 0x187   :  { %272 = vmatprep.mubr.msk.f32.mxu0 %vm71_vm0, %v134_v46 }
 0x18a   :  { %v135_v47 = vld [vmem:[#allocation2 + $0x8] sm:$0xff] }
 0x18b   :  { %273 = vmatmul.mubr.msk.f32.vlgmr.msra.gmra.mrb[0].mxu0 %vm71_vm0, %v135_v47 }
 0x25e   :  { %v274_v49 = vpop.f32.mrb[0].mxu0 }
 0x25f   :  { %v226_v51 = vadd.f32 %v274_v49, %v255_v48  ;;  %v220_v52 = vpop.f32.mrb[1].mxu0 }
 0x260   :  { %v221_v54 = vadd.f32 %v255_v48, %v220_v52 }
 0x261   :  { %v232_v55 = vadd.f32 %v230_v50, %v226_v51 }
 0x262   :  { %v231_v56 = vadd.f32 %v229_v53, %v221_v54 }
 0x263   :  { %234 = vst [vmem:[#allocation9 + $0x8] sm:$0xff] %v232_v55 }
 0x264   :  { %233 = vst [vmem:[#allocation9] sm:$0xff] %v231_v56 }
 0x265   :  { %374 = shalt.err (!%p371_p0)
}
 0x266   :  { %s375_s18 = scalar_lea.hbm %s522_s6, 256 }
 0x267   :  { %p376_p1 = scmp.ne.s32.totalorder %s522_s6, %s375_s18  ;;  %p379_p2 = scmp.lt.u32.totalorder %s375_s18, %s522_s6 }
 0x269   :  { %p381_p3 = pnand %p379_p2, %p376_p1 }
 0x26b   :  { %384 = shalt.err (!%p381_p3)
}
 0x26c   :  { %246 = dma.vmem_to_hbm [thread:$0]  %s241_s15, 256, %s522_s6, [#allocation5], %s393_s9, %s393_s9, %s394_s10  }
 0x26d   :  { %389 = dma.done.wait [#allocation5], 256  }
 0x26e   :  { %390 = vsyncadd [#allocation5], 4294967040 }
 0x26f   :  { %250 = vsyncpa [#allocation4], 1 }
 0x270   :  { %251 = vsyncpa [#allocation7], 1 }
 0x271   :  { %252 = vsyncpa [#allocation5], 1 }

</bundles_post_ra>
